<compile_context>
chip_gen: v6e
topology: v6e:2x2x1
jax: 0.10.0
libtpu: 0.0.40
codegen_flags: <defaults>
</compile_context>

<pallas_src>
import math

import jax
import jax.numpy as jnp
from jax.experimental import pallas as pl
from jax.experimental.pallas import tpu as pltpu

# Explicit scoped-VMEM cap: safe on v5e (raises its 16 MiB default), and equal
# to the v6e/v7x default so it leaves headroom on v7x's 64 MiB physical VMEM.
_VMEM_LIMIT_BYTES = 32 * 1024 * 1024


def _qkv_proj_kernel(x_ref, wq_ref, wk_ref, wv_ref, bq_ref, bk_ref, bv_ref,
                     q_ref, k_ref, v_ref):
    """Per (batch, head): q/k/v = x @ W_h + b_h, q pre-scaled by 1/sqrt(hd)."""
    hd = q_ref.shape[-1]
    scale = 1.0 / math.sqrt(hd)
    x = x_ref[0]                                             # (T, C) bf16
    q = jnp.dot(x, wq_ref[0], preferred_element_type=jnp.float32) + bq_ref[0]
    k = jnp.dot(x, wk_ref[0], preferred_element_type=jnp.float32) + bk_ref[0]
    v = jnp.dot(x, wv_ref[0], preferred_element_type=jnp.float32) + bv_ref[0]
    q_ref[0, 0] = (q * scale).astype(q_ref.dtype)            # fold scale into q
    k_ref[0, 0] = k.astype(k_ref.dtype)
    v_ref[0, 0] = v.astype(v_ref.dtype)


def _flash_attn_proj_kernel(q_ref, k_ref, v_ref, wp_ref, bp_ref, o_ref,
                            m_sc, l_sc, acc_sc, out_sc):
    """Online-softmax causal attention + fused output projection accumulation."""
    qi = pl.program_id(1)
    h = pl.program_id(2)
    ki = pl.program_id(3)
    n_head = pl.num_programs(2)
    n_kv = pl.num_programs(3)
    tq = q_ref.shape[2]
    tk = k_ref.shape[2]

    @pl.when((h == 0) & (ki == 0))
    def _():                                       # new (batch, q-tile)
        out_sc[...] = jnp.zeros_like(out_sc)

    @pl.when(ki == 0)
    def _():                                       # new head: reset online softmax
        m_sc[...] = jnp.full_like(m_sc, -jnp.inf)
        l_sc[...] = jnp.zeros_like(l_sc)
        acc_sc[...] = jnp.zeros_like(acc_sc)

    # Skip kv blocks strictly above the causal diagonal (~2x FLOP savings).
    @pl.when(ki * tk <= qi * tq + (tq - 1))
    def _():
        q = q_ref[0, 0]                            # (tq, hd) bf16, pre-scaled
        k = k_ref[0, 0]                            # (tk, hd) bf16
        v = v_ref[0, 0]                            # (tk, hd) bf16
        # Scores: contract last dims directly (no explicit k transpose).
        s = jax.lax.dot_general(q, k, (((1,), (1,)), ((), ())),
                                preferred_element_type=jnp.float32)  # (tq, tk)
        # Block-local causal mask (no-op select on fully-visible blocks).
        row = qi * tq + jax.lax.broadcasted_iota(jnp.int32, (tq, tk), 0)
        col = ki * tk + jax.lax.broadcasted_iota(jnp.int32, (tq, tk), 1)
        s = jnp.where(col <= row, s, -jnp.inf)
        m_prev = m_sc[...]
        m_new = jnp.maximum(m_prev, s.max(axis=-1, keepdims=True))
        alpha = jnp.exp(m_prev - m_new)
        p = jnp.exp(s - m_new)
        l_sc[...] = alpha * l_sc[...] + p.sum(axis=-1, keepdims=True)
        acc_sc[...] = alpha * acc_sc[...] + jnp.dot(
            p.astype(v.dtype), v, preferred_element_type=jnp.float32)
        m_sc[...] = m_new

    @pl.when(ki == n_kv - 1)
    def _():                                       # head done: fold into out-proj
        y_h = acc_sc[...] * pl.reciprocal(l_sc[...], approx=True)    # (tq, hd) f32
        out_sc[...] += jnp.dot(y_h.astype(wp_ref.dtype), wp_ref[0],
                               preferred_element_type=jnp.float32)   # (tq, C)

    @pl.when((h == n_head - 1) & (ki == n_kv - 1))
    def _():                                       # all heads done: bias + write
        o_ref[0] = (out_sc[...] + bp_ref[...]).astype(o_ref.dtype)


def causal_self_attention(x, w_qkv, b_qkv, w_proj, b_proj, *, n_head,
                          q_tile=128, kv_tile=128):
    """x: (B, T, C). Weights stored (in_features, out_features): y = x @ W + b."""
    B, T, C = x.shape
    assert C % n_head == 0
    hd = C // n_head
    tq = min(q_tile, T)
    tk = min(kv_tile, T)
    assert T % tq == 0 and T % tk == 0

    cdt = jnp.bfloat16   # MXU operand dtype; all accumulation stays f32

    # One-time head-major weight layout (layout plumbing outside the kernels).
    wq, wk, wv = jnp.split(w_qkv, 3, axis=1)                       # each (C, C)
    headify = lambda w: w.reshape(C, n_head, hd).transpose(1, 0, 2).astype(cdt)
    wq_h, wk_h, wv_h = headify(wq), headify(wk), headify(wv)       # (H, C, hd)
    bq_h, bk_h, bv_h = [b.reshape(n_head, 1, hd).astype(jnp.float32)
                        for b in jnp.split(b_qkv, 3, axis=1)]      # (H, 1, hd)
    wp_h = w_proj.reshape(n_head, hd, C).astype(cdt)               # (H, hd, C)
    bp = b_proj.astype(jnp.float32)                                # (1, C)

    xc = x.astype(cdt)

    # ---- Kernel 1: head-major QKV projection --------------------------------
    qkv_shape = jax.ShapeDtypeStruct((B, n_head, T, hd), cdt)
    q, k, v = pl.pallas_call(
        _qkv_proj_kernel,
        out_shape=(qkv_shape, qkv_shape, qkv_shape),
        grid_spec=pltpu.PrefetchScalarGridSpec(
            num_scalar_prefetch=0,
            grid=(B, n_head),
            in_specs=[
                pl.BlockSpec((1, T, C), lambda b, h: (b, 0, 0)),      # x (fetched once per b)
                pl.BlockSpec((1, C, hd), lambda b, h: (h, 0, 0)),     # Wq head slab
                pl.BlockSpec((1, C, hd), lambda b, h: (h, 0, 0)),     # Wk head slab
                pl.BlockSpec((1, C, hd), lambda b, h: (h, 0, 0)),     # Wv head slab
                pl.BlockSpec((1, 1, hd), lambda b, h: (h, 0, 0)),     # bq
                pl.BlockSpec((1, 1, hd), lambda b, h: (h, 0, 0)),     # bk
                pl.BlockSpec((1, 1, hd), lambda b, h: (h, 0, 0)),     # bv
            ],
            out_specs=[pl.BlockSpec((1, 1, T, hd),
                                    lambda b, h: (b, h, 0, 0))] * 3,
        ),
        compiler_params=pltpu.CompilerParams(
            dimension_semantics=("parallel", "parallel"),
            vmem_limit_bytes=_VMEM_LIMIT_BYTES),
    )(xc, wq_h, wk_h, wv_h, bq_h, bk_h, bv_h)

    # ---- Kernel 2: flash attention + fused output projection ----------------
    # TODO(synk): constant-index blocks (b_proj) could be single-buffered
    # (pipeline_mode=pl.Buffered(1)) to save VMEM at GPT scale.
    out = pl.pallas_call(
        _flash_attn_proj_kernel,
        out_shape=jax.ShapeDtypeStruct((B, T, C), x.dtype),
        grid_spec=pltpu.PrefetchScalarGridSpec(
            num_scalar_prefetch=0,
            grid=(B, T // tq, n_head, T // tk),
            in_specs=[
                pl.BlockSpec((1, 1, tq, hd), lambda b, qi, h, ki: (b, h, qi, 0)),  # q
                pl.BlockSpec((1, 1, tk, hd), lambda b, qi, h, ki: (b, h, ki, 0)),  # k
                pl.BlockSpec((1, 1, tk, hd), lambda b, qi, h, ki: (b, h, ki, 0)),  # v
                pl.BlockSpec((1, hd, C), lambda b, qi, h, ki: (h, 0, 0)),          # W_proj head slab
                pl.BlockSpec((1, C), lambda b, qi, h, ki: (0, 0)),                 # b_proj
            ],
            out_specs=pl.BlockSpec((1, tq, C), lambda b, qi, h, ki: (b, qi, 0)),
            scratch_shapes=[
                pltpu.VMEM((tq, 1), jnp.float32),    # m: running max
                pltpu.VMEM((tq, 1), jnp.float32),    # l: running denominator
                pltpu.VMEM((tq, hd), jnp.float32),   # per-head context accumulator
                pltpu.VMEM((tq, C), jnp.float32),    # output-projection accumulator
            ],
        ),
        compiler_params=pltpu.CompilerParams(
            dimension_semantics=("parallel", "parallel", "arbitrary", "arbitrary"),
            vmem_limit_bytes=_VMEM_LIMIT_BYTES),
    )(q, k, v, wp_h, bp)
    return out


def _reference(x, w_qkv, b_qkv, w_proj, b_proj, n_head):
    """Plain-JAX f32 reference mirroring the PyTorch forward (eval mode)."""
    B, T, C = x.shape
    hd = C // n_head
    qkv = x @ w_qkv + b_qkv[0]
    q, k, v = jnp.split(qkv, 3, axis=2)
    q = q.reshape(B, T, n_head, hd).transpose(0, 2, 1, 3)
    k = k.reshape(B, T, n_head, hd).transpose(0, 2, 1, 3)
    v = v.reshape(B, T, n_head, hd).transpose(0, 2, 1, 3)
    att = jnp.einsum("bhqd,bhkd->bhqk", q, k) / math.sqrt(hd)
    mask = jnp.tril(jnp.ones((T, T), dtype=bool))
    att = jnp.where(mask[None, None], att, -jnp.inf)
    att = jax.nn.softmax(att, axis=-1)
    y = jnp.einsum("bhqk,bhkd->bhqd", att, v)
    y = y.transpose(0, 2, 1, 3).reshape(B, T, C)
    return y @ w_proj + b_proj[0]


if __name__ == "__main__":
    # config: n_embd=32, n_head=4, bias=True, dropout=0.0.
    # T=16 with 8-wide q/kv tiles exercises multi-tile online softmax, the
    # causal block-skip path, and diagonal/off-diagonal masking.
    B, T, C, n_head = 2, 16, 32, 4

    key = jax.random.PRNGKey(0)
    kx, k1, k2, k3, k4 = jax.random.split(key, 5)

    x = jax.random.normal(kx, (B, T, C), dtype=jnp.float32)
    w_qkv = jax.random.normal(k1, (C, 3 * C), dtype=jnp.float32) * 0.02
    b_qkv = jax.random.normal(k2, (1, 3 * C), dtype=jnp.float32) * 0.02
    w_proj = jax.random.normal(k3, (C, C), dtype=jnp.float32) * 0.02
    b_proj = jax.random.normal(k4, (1, C), dtype=jnp.float32) * 0.02

    y = causal_self_attention(x, w_qkv, b_qkv, w_proj, b_proj,
                              n_head=n_head, q_tile=8, kv_tile=8)
    y = jax.block_until_ready(y)

    y_ref = _reference(x, w_qkv, b_qkv, w_proj, b_proj, n_head)
    assert y.shape == (B, T, C)
    # bf16 MXU operands + approx reciprocal -> loosened tolerance vs f32 reference.
    assert jnp.allclose(y, y_ref, atol=2e-2, rtol=2e-2), "mismatch vs reference"

    print("KERNEL_OK")
</pallas_src>

<mosaic_0001>
module attributes {stable_mosaic.version = 11 : i64} {
  func.func @_qkv_proj_kernel(%arg0: i32, %arg1: i32, %arg2: memref<1x16x32xbf16, #tpu.memory_space<vmem>>, %arg3: memref<1x32x8xbf16, #tpu.memory_space<vmem>>, %arg4: memref<1x32x8xbf16, #tpu.memory_space<vmem>>, %arg5: memref<1x32x8xbf16, #tpu.memory_space<vmem>>, %arg6: memref<1x1x8xf32, #tpu.memory_space<vmem>>, %arg7: memref<1x1x8xf32, #tpu.memory_space<vmem>>, %arg8: memref<1x1x8xf32, #tpu.memory_space<vmem>>, %arg9: memref<1x1x16x8xbf16, #tpu.memory_space<vmem>>, %arg10: memref<1x1x16x8xbf16, #tpu.memory_space<vmem>>, %arg11: memref<1x1x16x8xbf16, #tpu.memory_space<vmem>>) attributes {dimension_semantics = [#tpu.dimension_semantics<parallel>, #tpu.dimension_semantics<parallel>], iteration_bounds = array<i64: 2, 4>, scalar_prefetch = 0 : i64, scratch_operands = 0 : i64, tpu.core_type = #tpu.core_type<tc>, window_params = [{transform_indices = @transform_0, window_bounds = array<i64: 1, 16, 32>}, {transform_indices = @transform_1, window_bounds = array<i64: 1, 32, 8>}, {transform_indices = @transform_2, window_bounds = array<i64: 1, 32, 8>}, {transform_indices = @transform_3, window_bounds = array<i64: 1, 32, 8>}, {transform_indices = @transform_4, window_bounds = array<i64: 1, 1, 8>}, {transform_indices = @transform_5, window_bounds = array<i64: 1, 1, 8>}, {transform_indices = @transform_6, window_bounds = array<i64: 1, 1, 8>}, {transform_indices = @transform_7, window_bounds = array<i64: 1, 1, 16, 8>}, {transform_indices = @transform_8, window_bounds = array<i64: 1, 1, 16, 8>}, {transform_indices = @transform_9, window_bounds = array<i64: 1, 1, 16, 8>}]} {
    %c0 = arith.constant 0 : index
    %c0_0 = arith.constant 0 : index
    %c0_1 = arith.constant 0 : index
    %0 = vector.load %arg2[%c0, %c0_0, %c0_1] : memref<1x16x32xbf16, #tpu.memory_space<vmem>>, vector<1x16x32xbf16>
    %1 = vector.shape_cast %0 : vector<1x16x32xbf16> to vector<16x32xbf16>
    %c0_2 = arith.constant 0 : index
    %c0_3 = arith.constant 0 : index
    %c0_4 = arith.constant 0 : index
    %2 = vector.load %arg3[%c0_2, %c0_3, %c0_4] : memref<1x32x8xbf16, #tpu.memory_space<vmem>>, vector<1x32x8xbf16>
    %3 = vector.shape_cast %2 : vector<1x32x8xbf16> to vector<32x8xbf16>
    %cst = arith.constant dense<0.000000e+00> : vector<16x8xf32>
    %4 = tpu.matmul %1, %3, %cst {dimension_numbers = #tpu.dot_dimension_numbers<[1], [0], [0], [1], [0, 0, 1, 1], [], []>} : vector<16x32xbf16>, vector<32x8xbf16>, vector<16x8xf32> -> vector<16x8xf32>
    %c0_5 = arith.constant 0 : index
    %c0_6 = arith.constant 0 : index
    %c0_7 = arith.constant 0 : index
    %5 = vector.load %arg6[%c0_5, %c0_6, %c0_7] : memref<1x1x8xf32, #tpu.memory_space<vmem>>, vector<1x1x8xf32>
    %6 = vector.shape_cast %5 : vector<1x1x8xf32> to vector<1x8xf32>
    %7 = vector.broadcast %6 : vector<1x8xf32> to vector<16x8xf32>
    %8 = arith.addf %4, %7 : vector<16x8xf32>
    %c0_8 = arith.constant 0 : index
    %c0_9 = arith.constant 0 : index
    %c0_10 = arith.constant 0 : index
    %9 = vector.load %arg4[%c0_8, %c0_9, %c0_10] : memref<1x32x8xbf16, #tpu.memory_space<vmem>>, vector<1x32x8xbf16>
    %10 = vector.shape_cast %9 : vector<1x32x8xbf16> to vector<32x8xbf16>
    %cst_11 = arith.constant dense<0.000000e+00> : vector<16x8xf32>
    %11 = tpu.matmul %1, %10, %cst_11 {dimension_numbers = #tpu.dot_dimension_numbers<[1], [0], [0], [1], [0, 0, 1, 1], [], []>} : vector<16x32xbf16>, vector<32x8xbf16>, vector<16x8xf32> -> vector<16x8xf32>
    %c0_12 = arith.constant 0 : index
    %c0_13 = arith.constant 0 : index
    %c0_14 = arith.constant 0 : index
    %12 = vector.load %arg7[%c0_12, %c0_13, %c0_14] : memref<1x1x8xf32, #tpu.memory_space<vmem>>, vector<1x1x8xf32>
    %13 = vector.shape_cast %12 : vector<1x1x8xf32> to vector<1x8xf32>
    %14 = vector.broadcast %13 : vector<1x8xf32> to vector<16x8xf32>
    %15 = arith.addf %11, %14 : vector<16x8xf32>
    %c0_15 = arith.constant 0 : index
    %c0_16 = arith.constant 0 : index
    %c0_17 = arith.constant 0 : index
    %16 = vector.load %arg5[%c0_15, %c0_16, %c0_17] : memref<1x32x8xbf16, #tpu.memory_space<vmem>>, vector<1x32x8xbf16>
    %17 = vector.shape_cast %16 : vector<1x32x8xbf16> to vector<32x8xbf16>
    %cst_18 = arith.constant dense<0.000000e+00> : vector<16x8xf32>
    %18 = tpu.matmul %1, %17, %cst_18 {dimension_numbers = #tpu.dot_dimension_numbers<[1], [0], [0], [1], [0, 0, 1, 1], [], []>} : vector<16x32xbf16>, vector<32x8xbf16>, vector<16x8xf32> -> vector<16x8xf32>
    %c0_19 = arith.constant 0 : index
    %c0_20 = arith.constant 0 : index
    %c0_21 = arith.constant 0 : index
    %19 = vector.load %arg8[%c0_19, %c0_20, %c0_21] : memref<1x1x8xf32, #tpu.memory_space<vmem>>, vector<1x1x8xf32>
    %20 = vector.shape_cast %19 : vector<1x1x8xf32> to vector<1x8xf32>
    %21 = vector.broadcast %20 : vector<1x8xf32> to vector<16x8xf32>
    %22 = arith.addf %18, %21 : vector<16x8xf32>
    %cst_22 = arith.constant 0.353553385 : f32
    %23 = vector.broadcast %cst_22 : f32 to vector<16x8xf32>
    %24 = arith.mulf %8, %23 : vector<16x8xf32>
    %25 = arith.truncf %24 : vector<16x8xf32> to vector<16x8xbf16>
    %c0_23 = arith.constant 0 : index
    %c0_24 = arith.constant 0 : index
    %c0_25 = arith.constant 0 : index
    %c0_26 = arith.constant 0 : index
    %26 = vector.load %arg9[%c0_23, %c0_24, %c0_25, %c0_26] : memref<1x1x16x8xbf16, #tpu.memory_space<vmem>>, vector<1x1x16x8xbf16>
    %27 = vector.shape_cast %26 : vector<1x1x16x8xbf16> to vector<16x8xbf16>
    %28 = vector.shape_cast %25 : vector<16x8xbf16> to vector<1x1x16x8xbf16>
    tpu.vector_store %arg9[%c0_23, %c0_24, %c0_25, %c0_26], %28 {strides = array<i32>} : memref<1x1x16x8xbf16, #tpu.memory_space<vmem>>, vector<1x1x16x8xbf16>,
    %29 = arith.truncf %15 : vector<16x8xf32> to vector<16x8xbf16>
    %c0_27 = arith.constant 0 : index
    %c0_28 = arith.constant 0 : index
    %c0_29 = arith.constant 0 : index
    %c0_30 = arith.constant 0 : index
    %30 = vector.load %arg10[%c0_27, %c0_28, %c0_29, %c0_30] : memref<1x1x16x8xbf16, #tpu.memory_space<vmem>>, vector<1x1x16x8xbf16>
    %31 = vector.shape_cast %30 : vector<1x1x16x8xbf16> to vector<16x8xbf16>
    %32 = vector.shape_cast %29 : vector<16x8xbf16> to vector<1x1x16x8xbf16>
    tpu.vector_store %arg10[%c0_27, %c0_28, %c0_29, %c0_30], %32 {strides = array<i32>} : memref<1x1x16x8xbf16, #tpu.memory_space<vmem>>, vector<1x1x16x8xbf16>,
    %33 = arith.truncf %22 : vector<16x8xf32> to vector<16x8xbf16>
    %c0_31 = arith.constant 0 : index
    %c0_32 = arith.constant 0 : index
    %c0_33 = arith.constant 0 : index
    %c0_34 = arith.constant 0 : index
    %34 = vector.load %arg11[%c0_31, %c0_32, %c0_33, %c0_34] : memref<1x1x16x8xbf16, #tpu.memory_space<vmem>>, vector<1x1x16x8xbf16>
    %35 = vector.shape_cast %34 : vector<1x1x16x8xbf16> to vector<16x8xbf16>
    %36 = vector.shape_cast %33 : vector<16x8xbf16> to vector<1x1x16x8xbf16>
    tpu.vector_store %arg11[%c0_31, %c0_32, %c0_33, %c0_34], %36 {strides = array<i32>} : memref<1x1x16x8xbf16, #tpu.memory_space<vmem>>, vector<1x1x16x8xbf16>,
    return
  }
  func.func @transform_0(%arg0: i32, %arg1: i32) -> (i32, i32, i32) {
    %c0_i32 = arith.constant 0 : i32
    %c0_i32_0 = arith.constant 0 : i32
    %c0_i32_1 = arith.constant 0 : i32
    return %arg0, %c0_i32, %c0_i32_0 : i32, i32, i32
  }
  func.func @transform_1(%arg0: i32, %arg1: i32) -> (i32, i32, i32) {
    %c0_i32 = arith.constant 0 : i32
    %c0_i32_0 = arith.constant 0 : i32
    %c0_i32_1 = arith.constant 0 : i32
    return %arg1, %c0_i32, %c0_i32_0 : i32, i32, i32
  }
  func.func @transform_2(%arg0: i32, %arg1: i32) -> (i32, i32, i32) {
    %c0_i32 = arith.constant 0 : i32
    %c0_i32_0 = arith.constant 0 : i32
    %c0_i32_1 = arith.constant 0 : i32
    return %arg1, %c0_i32, %c0_i32_0 : i32, i32, i32
  }
  func.func @transform_3(%arg0: i32, %arg1: i32) -> (i32, i32, i32) {
    %c0_i32 = arith.constant 0 : i32
    %c0_i32_0 = arith.constant 0 : i32
    %c0_i32_1 = arith.constant 0 : i32
    return %arg1, %c0_i32, %c0_i32_0 : i32, i32, i32
  }
  func.func @transform_4(%arg0: i32, %arg1: i32) -> (i32, i32, i32) {
    %c0_i32 = arith.constant 0 : i32
    %c0_i32_0 = arith.constant 0 : i32
    %c0_i32_1 = arith.constant 0 : i32
    return %arg1, %c0_i32, %c0_i32_0 : i32, i32, i32
  }
  func.func @transform_5(%arg0: i32, %arg1: i32) -> (i32, i32, i32) {
    %c0_i32 = arith.constant 0 : i32
    %c0_i32_0 = arith.constant 0 : i32
    %c0_i32_1 = arith.constant 0 : i32
    return %arg1, %c0_i32, %c0_i32_0 : i32, i32, i32
  }
  func.func @transform_6(%arg0: i32, %arg1: i32) -> (i32, i32, i32) {
    %c0_i32 = arith.constant 0 : i32
    %c0_i32_0 = arith.constant 0 : i32
    %c0_i32_1 = arith.constant 0 : i32
    return %arg1, %c0_i32, %c0_i32_0 : i32, i32, i32
  }
  func.func @transform_7(%arg0: i32, %arg1: i32) -> (i32, i32, i32, i32) {
    %c0_i32 = arith.constant 0 : i32
    %c0_i32_0 = arith.constant 0 : i32
    %c0_i32_1 = arith.constant 0 : i32
    return %arg0, %arg1, %c0_i32, %c0_i32_0 : i32, i32, i32, i32
  }
  func.func @transform_8(%arg0: i32, %arg1: i32) -> (i32, i32, i32, i32) {
    %c0_i32 = arith.constant 0 : i32
    %c0_i32_0 = arith.constant 0 : i32
    %c0_i32_1 = arith.constant 0 : i32
    return %arg0, %arg1, %c0_i32, %c0_i32_0 : i32, i32, i32, i32
  }
  func.func @transform_9(%arg0: i32, %arg1: i32) -> (i32, i32, i32, i32) {
    %c0_i32 = arith.constant 0 : i32
    %c0_i32_0 = arith.constant 0 : i32
    %c0_i32_1 = arith.constant 0 : i32
    return %arg0, %arg1, %c0_i32, %c0_i32_0 : i32, i32, i32, i32
  }
}

</mosaic_0001>

<bundles_post_ra>
// kernel: tpu_custom_call.1
= control target key start
LH: loop header
LB: loop body
LE: loop exit
PB: predicated region body
PF: predicated region fallthrough
CT: control target
= control target key end

     0   :  { %s1221_s30 = smov 0   ;;  %s1223_s10 = smov 0   ;;  %s1315_s0 = inlined_call_operand.vmem [shape: bf16[2,16,32], index: 0, kind: input, shape index: {}]   ;;  %s1316_s1 = inlined_call_operand.vmem [shape: bf16[4,32,8], index: 1, kind: input, shape index: {}]   ;;  %s1317_s2 = inlined_call_operand.vmem [shape: bf16[4,32,8], index: 2, kind: input, shape index: {}]   ;;  %s1318_s3 = inlined_call_operand.vmem [shape: bf16[4,32,8], index: 3, kind: input, shape index: {}]   ;;  %s1319_s4 = inlined_call_operand.vmem [shape: f32[4,1,8], index: 4, kind: input, shape index: {}]   ;;  %s1320_s5 = inlined_call_operand.vmem [shape: f32[4,1,8], index: 5, kind: input, shape index: {}]   ;;  %s1321_s6 = inlined_call_operand.vmem [shape: f32[4,1,8], index: 6, kind: input, shape index: {}]   ;;  %s1322_s7 = inlined_call_operand.vmem [shape: bf16[2,4,16,8], index: 7, kind: output, shape index: {0}]   ;;  %s1323_s8 = inlined_call_operand.vmem [shape: bf16[2,4,16,8], index: 8, kind: output, shape index: {1}]   ;;  %s1324_s9 = inlined_call_operand.vmem [shape: bf16[2,4,16,8], index: 9, kind: output, shape index: {2}]  }
   0x1   :  { %s1225_s11 = smov 0   ;;  %s1227_s12 = smov 0  }
   0x2   :  { %s1229_s13 = smov 0  }
   0x3 LB: > { %s29_s14 = sadd.s32 1, %s1159_s11  ;;  %s32_s15 = sadd.s32 1, %s1163_s12  ;;  %s1167_s13 = sphi %s1229_s13, %s20_s13   ;;  %s1163_s12 = sphi %s1227_s12, %s1328_s12   ;;  %s1159_s11 = sphi %s1225_s11, %s1327_s11   ;;  %s1155_s10 = sphi %s1223_s10, %s1326_s10   ;;  %s1151_s30 = sphi %s1221_s30, %s1325_s30  }
   0x4   : > { %p30_p0 = scmp.ge.s32.totalorder %s29_s14, 4  ;;  %p998_p1 = scmp.ge.s32.totalorder %s1167_s13, 1 }
   0x5   : > { %p364_p2 = scmp.lt.s32.totalorder %s1167_s13, 9 }
   0x6   : > { %s1330_s14 = smov (%p30_p0, %s29_s14), 0  ;;  %s1332_s15 = smov (!%p30_p0, %s32_s15), %s1163_s12 }
   0x7   : > { %p365_p3 = pnand %p998_p1, %p364_p2  ;;  %p34_p4 = scmp.ge.s32.totalorder %s1332_s15, 2 }
   0x8   : > { %p451_p5 = scmp.lt.s32.totalorder (!%p365_p3), %s1151_s30, 3  ;;  %p446_p6 = scmp.lt.s32.totalorder (!%p365_p3), %s1155_s10, 1 }
   0x9   : > { %s1334_s15 = smov (%p34_p4, %s1332_s15), 0  ;;  %368 = sbr.rel (%p365_p3) target bundleno = 235 (0xeb), region = 48 }
   0xe   : > { %v1169_v0 = vmov 0.0   ;;  %s1336_s30 = smov (!%p451_p5, %s1151_s30), 3  ;;  %vm1170_vm0 = vmmov 0   ;;  %s1338_s10 = smov (!%p446_p6, %s1155_s10), 1  ;;  %vm533_vm1 = vcmask 261120   ;;  %vm716_vm2 = vcmask 60416  }
   0xf   : > { %1056 = vmatprep.subr.bf16.mxu0 %v1169_v0  ;;  %1064 = vmatprep.subr.bf16.mxu1 %v1169_v0  ;;  %s1038_s16 = sshll.u32 %s1336_s30, 4  ;;  %s1037_s23 = sshll.u32 %s1338_s10, 3 }
  0x10   : > { %1060 = vmatprep.mubr.msk.bf16.mxu0 %vm1170_vm0, %v1169_v0  ;;  %1068 = vmatprep.mubr.msk.bf16.mxu1 %vm1170_vm0, %v1169_v0  ;;  %s455_s19 = scalar_lea.vmem %s1316_s1, %s1038_s16  ;;  %s460_s22 = scalar_lea.vmem %s1317_s2, %s1038_s16 }
  0x11   : > { %v1122_v1 = vld [vmem:[%s455_s19 + $0x8] sm:$0xff]   ;;  %v1124_v3 = vld [vmem:[%s455_s19] sm:$0xff]   ;;  %s450_s26 = scalar_lea.vmem %s1315_s0, %s1037_s23  ;;  %s465_s29 = scalar_lea.vmem %s1318_s3, %s1038_s16 }
  0x12   : > { %v1123_v2 = vld [vmem:[%s460_s22 + $0x8] sm:$0xff]   ;;  %1057 = vmatpush3.bf16.msra.mxu0 %v1122_v1  ;;  %v1126_v4 = vld [vmem:[%s460_s22] sm:$0xff]   ;;  %s468_s17 = scalar_lea.vmem %s1319_s4, %s1336_s30  ;;  %s1007_s18 = sshll.u32 %s1336_s30, 1 }
  0x13   : > { %1058 = vmatprep.subr.bf16.mxu0 %v1169_v0  ;;  %1065 = vmatpush3.bf16.msra.mxu1 %v1123_v2  ;;  %v1125_v5 = vld [vmem:[%s450_s26] sm:$0xff]   ;;  %v1127_v6 = vld [vmem:[%s465_s29 + $0x8] sm:$0xff]   ;;  %s471_s21 = scalar_lea.vmem %s1320_s5, %s1336_s30  ;;  %s481_s22 = sadd.s32 %s1037_s23, %s1007_s18 }
  0x14   : > { %1066 = vmatprep.subr.bf16.mxu1 %v1169_v0  ;;  %v1128_v7 = vld [vmem:[%s465_s29] sm:$0xff]   ;;  %s1009_s24 = sshll.u32 %s481_s22, 2  ;;  %s474_s10 = scalar_lea.vmem %s1321_s6, %s1336_s30 }
  0x15   : > { %v1016_v8 = vld [vmem:[%s468_s17] ss:$0 sm:$0xff]  ;;  %s492_s27 = scalar_lea.vmem %s1323_s8, %s1009_s24  ;;  %s483_s17 = scalar_lea.vmem %s1322_s7, %s1009_s24 }
  0x16   : > { %1059 = vmatpush3.bf16.msra.mxu0 %v1124_v3  ;;  %v1021_v9 = vld [vmem:[%s471_s21] ss:$0 sm:$0xff]  ;;  %s501_s19 = scalar_lea.vmem %s1324_s9, %s1009_s24 }
  0x17   : > { %1067 = vmatpush3.bf16.msra.mxu1 %v1126_v4  ;;  %1072 = vmatprep.subr.bf16.mxu0 %v1169_v0  ;;  %v1025_v24 = vld [vmem:[%s474_s10] ss:$0 sm:$0xff] }
  0x19   : > { %1061 = vmatmul.mubr.msk.bf16.vlgmr.msra.gmra.mxu0 %vm533_vm1, %v1125_v5 }
  0x1a   : > { %1073 = vmatpush3.bf16.msra.mxu0 %v1127_v6  ;;  %1069 = vmatmul.mubr.msk.bf16.vlgmr.msra.gmra.mxu1 %vm533_vm1, %v1125_v5 }
  0x1b   : > { %1074 = vmatprep.subr.bf16.mxu0 %v1169_v0  ;;  %1076 = vmatprep.mubr.msk.bf16.mxu0 %vm1170_vm0, %v1169_v0 }
  0x1e   : > { %1075 = vmatpush3.bf16.msra.mxu0 %v1128_v7 }
  0x21   : > { %1077 = vmatmul.mubr.msk.bf16.vlgmr.msra.gmra.mxu0 %vm533_vm1, %v1125_v5 }
  0xd9   : > { %v571_v10 = vpop.f32.mrf.mxu0 }
  0xda   : > { %v572_v11 = vadd.f32 %v1016_v8, %v571_v10  ;;  %v635_v12 = vpop.f32.mrf.mxu1 }
  0xdb   : > { %v1062_v13 = vpop.f32.mrf.mxu0  ;;  %v636_v14 = vadd.f32 %v1021_v9, %v635_v12 }
  0xdc   : > { %v706_v15 = vmul.f32 0.35355338, %v572_v11  ;;  %v1070_v16 = vpop.f32.mrf.mxu1 }
  0xdd   : > { %v1043_v17 = vpack.c.bf16 %v636_v14, %v636_v14  ;;  %v574_v18 = vpop.f32.mrf.mxu0 }
  0xde   : > { %v1041_v19 = vpack.c.bf16 %v706_v15, %v706_v15  ;;  %v575_v20 = vadd.f32 %v1016_v8, %v574_v18  ;;  %v638_v21 = vpop.f32.mrf.mxu1 }
  0xdf   : > { %727 = vst.msk [vmem:[%s492_s27] sm:$0xf] %vm716_vm2, %v1043_v17  ;;  %v1063_v22 = vpop.f32.mrf.mxu0  ;;  %v639_v23 = vadd.f32 %v1021_v9, %v638_v21 }
  0xe0   : > { %717 = vst.msk [vmem:[%s483_s17] sm:$0xf] %vm716_vm2, %v1041_v19  ;;  %v707_v25 = vmul.f32 0.35355338, %v575_v20  ;;  %v1071_v26 = vpop.f32.mrf.mxu1 }
  0xe1   : > { %v1044_v27 = vpack.c.bf16 %v639_v23, %v639_v23  ;;  %v699_v28 = vpop.f32.mrf.mxu0 }
  0xe2   : > { %v1042_v29 = vpack.c.bf16 %v707_v25, %v707_v25  ;;  %v700_v30 = vadd.f32 %v1025_v24, %v699_v28 }
  0xe3   : > { %728 = vst.msk [vmem:[%s492_s27 + $0x4] sm:$0xf] %vm716_vm2, %v1044_v27  ;;  %v1078_v31 = vpop.f32.mrf.mxu0 }
  0xe4   : > { %718 = vst.msk [vmem:[%s483_s17 + $0x4] sm:$0xf] %vm716_vm2, %v1042_v29  ;;  %v1045_v32 = vpack.c.bf16 %v700_v30, %v700_v30 }
  0xe5   : > { %v702_v33 = vpop.f32.mrf.mxu0 }
  0xe6   : > { %737 = vst.msk [vmem:[%s501_s19] sm:$0xf] %vm716_vm2, %v1045_v32  ;;  %v703_v34 = vadd.f32 %v1025_v24, %v702_v33 }
  0xe7   : > { %v1079_v35 = vpop.f32.mrf.mxu0 }
  0xe8   : > { %v1046_v36 = vpack.c.bf16 %v703_v34, %v703_v34 }
  0xea   : > { %738 = vst.msk [vmem:[%s501_s19 + $0x4] sm:$0xf] %vm716_vm2, %v1046_v36 }
  0xeb PF: > { %s20_s13 = sadd.s32 1, %s1167_s13   ;;  %s1325_s30 = smov %s1159_s11 }
  0xec   : > { %p17_p7 = scmp.ge.s32.totalorder %s20_s13, 10   ;;  %s1326_s10 = smov %s1163_s12 }
  0xed   : > { %s1327_s11 = smov %s1330_s14  ;;  %s1328_s12 = smov %s1334_s15 }
  0xee   :  { %19 = sbr.rel (!%p17_p7) target bundleno = 3 (0x3), region = 120 }

</bundles_post_ra>
